<compile_context>
chip_gen: v7x
topology: tpu7x:2x2x1
jax: 0.10.0
libtpu: 0.0.40
codegen_flags: <defaults>
</compile_context>

<pallas_src>
import math

import jax
import jax.numpy as jnp
from jax import lax
from jax.experimental import pallas as pl
from jax.experimental.pallas import tpu as pltpu


def _cdiv(a, b):
    return -(-a // b)


def _round_up(a, b):
    return _cdiv(a, b) * b


def _make_select_kernel(k, P):
    """Small-table path (P <= ~8): exact row select/accumulate on the VPU."""

    def kernel(x_ref, id_ref, rep_ref, invpos_ref, phase_ref, embt_ref, o_ref):
        # x_ref/id_ref: (TM, k) f32; rep_ref: (k, k*D) 0/1; invpos/phase: (1, k*D)
        # embt_ref: (P, k*D) -- table row p tiled k times; o_ref: (TM, k*D)
        #
        # Replicate each packed column across its D-lane span via exact 0/1-row
        # outer broadcasts (no bf16 rounding of timestamps, no lane-sparse work).
        x_rep = x_ref[:, 0:1] * rep_ref[0:1, :]
        id_rep = id_ref[:, 0:1] * rep_ref[0:1, :]
        for j in range(1, k):                       # short static unroll, k <= 32
            r = rep_ref[j:j + 1, :]
            x_rep = x_rep + x_ref[:, j:j + 1] * r
            id_rep = id_rep + id_ref[:, j:j + 1] * r

        # Single full-width transcendental: sin on even lanes, cos = sin(.+pi/2).
        out = jnp.sin(x_rep * invpos_ref[...] + phase_ref[...])

        # P-way select/accumulate; table rows re-loaded per iteration (cheap vld,
        # no vreg hoarding).  Out-of-range ids contribute a zero embedding row
        # (PyTorch nn.Embedding would raise) -- documented behavior.
        for p in range(P):
            out = out + jnp.where(id_rep == float(p), embt_ref[p:p + 1, :], 0.0)

        o_ref[...] = out.astype(o_ref.dtype)

    return kernel


def _make_matmul_kernel(k, P):
    """Larger-table path (P > 8): one-hot gather on the otherwise-idle MXU."""

    def kernel(x_ref, id_ref, rep_ref, invpos_ref, phase_ref, repP_ref,
               embbd_ref, o_ref):
        # rep_ref: (k, k*D) 0/1; repP_ref: (k, k*P) 0/1;
        # embbd_ref: (k*P, k*D) block-diagonal embedding table.
        x_rep = x_ref[:, 0:1] * rep_ref[0:1, :]
        for j in range(1, k):
            x_rep = x_rep + x_ref[:, j:j + 1] * rep_ref[j:j + 1, :]
        te = jnp.sin(x_rep * invpos_ref[...] + phase_ref[...])

        # ids replicated over P-lane spans and shifted by j*P so a single
        # block-diagonal matmul gathers all k packed tokens at once.
        id_rep = id_ref[:, 0:1] * repP_ref[0:1, :]
        for j in range(1, k):
            id_rep = id_rep + (id_ref[:, j:j + 1] + float(j * P)) * repP_ref[j:j + 1, :]

        # Hoisted (j-invariant) iota; exact integer-valued f32 comparison.
        iota = lax.broadcasted_iota(jnp.int32, id_rep.shape, 1).astype(jnp.float32)
        onehot = (id_rep == iota).astype(jnp.float32)          # (TM, k*P)

        # Precision.HIGH (bf16x3): the one-hot LHS is exact in bf16, so the table
        # keeps ~f32 precision at half the MXU passes of HIGHEST (use HIGHEST if
        # a bit-exact gather is required).
        emb = jnp.dot(onehot, embbd_ref[...],
                      preferred_element_type=jnp.float32,
                      precision=lax.Precision.HIGH)            # (TM, k*D)

        o_ref[...] = (te + emb).astype(o_ref.dtype)

    return kernel


def events_embedding(x, pp_id, position_vec, emb_table, *, tile_rows=1024,
                     out_dtype=jnp.float32, select_path_max_pps=8):
    """x: [B, S] f32 event times; pp_id: [B, S] int ids; returns [B, S, D]."""
    B, S = x.shape
    D = int(position_vec.shape[0])
    P = int(emb_table.shape[0])
    N = B * S

    # ---- lane packing: k tokens per output row so the writeback is lane-dense.
    if D % 128 == 0:
        k = 1
    else:
        k = 128 // math.gcd(D, 128)      # smallest k with (k*D) % 128 == 0
        if k > 32 or k * D > 1024:
            k = 1                        # awkward D: fall back to masked stores
    kD = k * D

    use_matmul = P > select_path_max_pps

    # ---- tiling: big tiles, but >=4 grid steps when rows allow (v7x megacore).
    rows = max(1, _cdiv(N, k))
    rows8 = _round_up(rows, 8)
    tm = min(tile_rows, rows8, max(8, _round_up(_cdiv(rows8, 4), 8)))
    if use_matmul:
        # cap (TM, k*P) one-hot / id_rep intermediates to ~8 MiB of VMEM
        per_row = 3 * k * P * 4
        tm = min(tm, max(8, ((8 << 20) // per_row) // 8 * 8))
    tm = max(8, tm)
    rows_final = _round_up(rows8, tm)
    total_tokens = rows_final * k
    grid = (rows_final // tm,)

    # ---- inputs (ids carried as f32: exact for any valid id < 2**24).
    x_flat = x.reshape(N).astype(jnp.float32)
    id_flat = pp_id.reshape(N).astype(jnp.float32)
    if total_tokens != N:
        x_flat = jnp.pad(x_flat, (0, total_tokens - N))
        id_flat = jnp.pad(id_flat, (0, total_tokens - N))
    x2 = x_flat.reshape(rows_final, k)
    id2 = id_flat.reshape(rows_final, k)

    # ---- constants, pre-tiled to full lane width in the wrapper.
    pos = position_vec.astype(jnp.float32)
    inv_pos_t = jnp.tile((1.0 / pos).reshape(1, D), (1, k))                  # (1, kD)
    phase = jnp.where(jnp.arange(D) % 2 == 0, 0.0, math.pi / 2.0)
    phase_t = jnp.tile(phase.astype(jnp.float32).reshape(1, D), (1, k))      # (1, kD)
    rep = jnp.kron(jnp.eye(k, dtype=jnp.float32),
                   jnp.ones((1, D), jnp.float32))                           # (k, kD)
    emb = emb_table.astype(jnp.float32)

    in_specs = [
        pl.BlockSpec((tm, k), lambda i: (i, 0)),       # packed event times
        pl.BlockSpec((tm, k), lambda i: (i, 0)),       # packed ids (f32)
        pl.BlockSpec((k, kD), lambda i: (0, 0)),       # 0/1 replication rows
        pl.BlockSpec((1, kD), lambda i: (0, 0)),       # 1/position_vec (tiled)
        pl.BlockSpec((1, kD), lambda i: (0, 0)),       # phase (tiled)
    ]
    operands = [x2, id2, rep, inv_pos_t, phase_t]

    if use_matmul:
        repP = jnp.kron(jnp.eye(k, dtype=jnp.float32),
                        jnp.ones((1, P), jnp.float32))                      # (k, kP)
        emb_bd = jnp.kron(jnp.eye(k, dtype=jnp.float32), emb)               # (kP, kD)
        in_specs += [pl.BlockSpec((k, k * P), lambda i: (0, 0)),
                     pl.BlockSpec((k * P, kD), lambda i: (0, 0))]
        operands += [repP, emb_bd]
        kernel = _make_matmul_kernel(k, P)
    else:
        emb_tiled = jnp.tile(emb, (1, k))                                    # (P, kD)
        in_specs += [pl.BlockSpec((P, kD), lambda i: (0, 0))]
        operands += [emb_tiled]
        kernel = _make_select_kernel(k, P)

    # ---- explicit VMEM budget (double-buffered blocks + in-kernel temporaries).
    out_itemsize = jnp.dtype(out_dtype).itemsize
    est = 2 * 2 * (tm * k * 4)                       # x + id blocks
    est += 2 * tm * kD * out_itemsize                # output block
    est += 2 * (k * kD + 2 * kD) * 4                 # rep / inv_pos / phase
    if use_matmul:
        est += 2 * (k * k * P + k * P * kD) * 4      # repP + block-diag table
        est += 3 * tm * k * P * 4                    # id_rep / iota / one-hot
    else:
        est += 2 * P * kD * 4                        # tiled table
    est += 4 * tm * kD * 4                           # f32 temporaries headroom
    vmem_limit = int(min(64 << 20, max(16 << 20, 2 * est)))

    out = pl.pallas_call(
        kernel,
        out_shape=jax.ShapeDtypeStruct((rows_final, kD), out_dtype),
        grid_spec=pltpu.PrefetchScalarGridSpec(
            num_scalar_prefetch=0,
            grid=grid,
            in_specs=in_specs,
            out_specs=pl.BlockSpec((tm, kD), lambda i: (i, 0)),
        ),
        compiler_params=pltpu.CompilerParams(
            dimension_semantics=("parallel",),
            vmem_limit_bytes=vmem_limit),
    )(*operands)

    # (rows, k*D) -> (rows*k, D) is a free row-major reshape; only slice if padded.
    out_tok = out.reshape(rows_final * k, D)
    if total_tokens != N:
        out_tok = out_tok[:N]
    return out_tok.reshape(B, S, D)


def _reference(x, pp_id, position_vec, emb_table):
    te = x[..., None] / position_vec
    lane = jnp.arange(position_vec.shape[0])
    te = jnp.where(lane % 2 == 0, jnp.sin(te), jnp.cos(te))
    return te + emb_table[pp_id.astype(jnp.int32)]


if __name__ == "__main__":
    B, S = 2, 8          # batch, sequence of events
    d_model = 32
    num_pps = 4

    # Deterministic parameter init (mirrors nn.Module __init__ shapes).
    position_vec = jnp.asarray(
        [math.pow(10000.0, 2.0 * (i // 2) / d_model) for i in range(d_model)],
        dtype=jnp.float32)

    key = jax.random.PRNGKey(0)
    k_emb, k_x, k_id = jax.random.split(key, 3)
    emb_table = jax.random.normal(k_emb, (num_pps, d_model), dtype=jnp.float32)

    # Example inputs: event timestamps and event-type ids.
    x = jax.random.uniform(k_x, (B, S), dtype=jnp.float32) * 10.0
    pp_id = jax.random.randint(k_id, (B, S), 0, num_pps, dtype=jnp.int32)

    out = jax.block_until_ready(events_embedding(x, pp_id, position_vec, emb_table))

    ref = _reference(x, pp_id, position_vec, emb_table)
    assert out.shape == (B, S, d_model)
    assert jnp.allclose(out, ref, atol=1e-5, rtol=1e-5), "mismatch vs reference"

    print("KERNEL_OK")
</pallas_src>

<mosaic_0001>
module attributes {stable_mosaic.version = 11 : i64} {
  func.func @kernel(%arg0: i32, %arg1: memref<8x4xf32, #tpu.memory_space<vmem>>, %arg2: memref<8x4xf32, #tpu.memory_space<vmem>>, %arg3: memref<4x128xf32, #tpu.memory_space<vmem>>, %arg4: memref<1x128xf32, #tpu.memory_space<vmem>>, %arg5: memref<1x128xf32, #tpu.memory_space<vmem>>, %arg6: memref<4x128xf32, #tpu.memory_space<vmem>>, %arg7: memref<8x128xf32, #tpu.memory_space<vmem>>) attributes {dimension_semantics = [#tpu.dimension_semantics<parallel>], iteration_bounds = array<i64: 1>, scalar_prefetch = 0 : i64, scratch_operands = 0 : i64, tpu.core_type = #tpu.core_type<tc>, window_params = [{transform_indices = @transform_0, window_bounds = array<i64: 8, 4>}, {transform_indices = @transform_1, window_bounds = array<i64: 8, 4>}, {pipeline_mode = #tpu.pipeline_mode<synchronous>, transform_indices = @transform_2, window_bounds = array<i64: 4, 128>}, {pipeline_mode = #tpu.pipeline_mode<synchronous>, transform_indices = @transform_3, window_bounds = array<i64: 1, 128>}, {pipeline_mode = #tpu.pipeline_mode<synchronous>, transform_indices = @transform_4, window_bounds = array<i64: 1, 128>}, {pipeline_mode = #tpu.pipeline_mode<synchronous>, transform_indices = @transform_5, window_bounds = array<i64: 4, 128>}, {transform_indices = @transform_6, window_bounds = array<i64: 8, 128>}]} {
    %c0 = arith.constant 0 : index
    %c0_0 = arith.constant 0 : index
    %0 = vector.load %arg1[%c0, %c0_0] : memref<8x4xf32, #tpu.memory_space<vmem>>, vector<8x1xf32>
    %c0_1 = arith.constant 0 : index
    %c0_2 = arith.constant 0 : index
    %1 = vector.load %arg3[%c0_1, %c0_2] : memref<4x128xf32, #tpu.memory_space<vmem>>, vector<1x128xf32>
    %2 = vector.broadcast %0 : vector<8x1xf32> to vector<8x128xf32>
    %3 = vector.broadcast %1 : vector<1x128xf32> to vector<8x128xf32>
    %4 = arith.mulf %2, %3 : vector<8x128xf32>
    %c0_3 = arith.constant 0 : index
    %c0_4 = arith.constant 0 : index
    %5 = vector.load %arg2[%c0_3, %c0_4] : memref<8x4xf32, #tpu.memory_space<vmem>>, vector<8x1xf32>
    %c0_5 = arith.constant 0 : index
    %c0_6 = arith.constant 0 : index
    %6 = vector.load %arg3[%c0_5, %c0_6] : memref<4x128xf32, #tpu.memory_space<vmem>>, vector<1x128xf32>
    %7 = vector.broadcast %5 : vector<8x1xf32> to vector<8x128xf32>
    %8 = vector.broadcast %6 : vector<1x128xf32> to vector<8x128xf32>
    %9 = arith.mulf %7, %8 : vector<8x128xf32>
    %c1 = arith.constant 1 : index
    %c0_7 = arith.constant 0 : index
    %10 = vector.load %arg3[%c1, %c0_7] : memref<4x128xf32, #tpu.memory_space<vmem>>, vector<1x128xf32>
    %c0_8 = arith.constant 0 : index
    %c1_9 = arith.constant 1 : index
    %11 = vector.load %arg1[%c0_8, %c1_9] : memref<8x4xf32, #tpu.memory_space<vmem>>, vector<8x1xf32>
    %12 = vector.broadcast %11 : vector<8x1xf32> to vector<8x128xf32>
    %13 = vector.broadcast %10 : vector<1x128xf32> to vector<8x128xf32>
    %14 = arith.mulf %12, %13 : vector<8x128xf32>
    %15 = arith.addf %4, %14 : vector<8x128xf32>
    %c0_10 = arith.constant 0 : index
    %c1_11 = arith.constant 1 : index
    %16 = vector.load %arg2[%c0_10, %c1_11] : memref<8x4xf32, #tpu.memory_space<vmem>>, vector<8x1xf32>
    %17 = vector.broadcast %16 : vector<8x1xf32> to vector<8x128xf32>
    %18 = vector.broadcast %10 : vector<1x128xf32> to vector<8x128xf32>
    %19 = arith.mulf %17, %18 : vector<8x128xf32>
    %20 = arith.addf %9, %19 : vector<8x128xf32>
    %c2 = arith.constant 2 : index
    %c0_12 = arith.constant 0 : index
    %21 = vector.load %arg3[%c2, %c0_12] : memref<4x128xf32, #tpu.memory_space<vmem>>, vector<1x128xf32>
    %c0_13 = arith.constant 0 : index
    %c2_14 = arith.constant 2 : index
    %22 = vector.load %arg1[%c0_13, %c2_14] : memref<8x4xf32, #tpu.memory_space<vmem>>, vector<8x1xf32>
    %23 = vector.broadcast %22 : vector<8x1xf32> to vector<8x128xf32>
    %24 = vector.broadcast %21 : vector<1x128xf32> to vector<8x128xf32>
    %25 = arith.mulf %23, %24 : vector<8x128xf32>
    %26 = arith.addf %15, %25 : vector<8x128xf32>
    %c0_15 = arith.constant 0 : index
    %c2_16 = arith.constant 2 : index
    %27 = vector.load %arg2[%c0_15, %c2_16] : memref<8x4xf32, #tpu.memory_space<vmem>>, vector<8x1xf32>
    %28 = vector.broadcast %27 : vector<8x1xf32> to vector<8x128xf32>
    %29 = vector.broadcast %21 : vector<1x128xf32> to vector<8x128xf32>
    %30 = arith.mulf %28, %29 : vector<8x128xf32>
    %31 = arith.addf %20, %30 : vector<8x128xf32>
    %c3 = arith.constant 3 : index
    %c0_17 = arith.constant 0 : index
    %32 = vector.load %arg3[%c3, %c0_17] : memref<4x128xf32, #tpu.memory_space<vmem>>, vector<1x128xf32>
    %c0_18 = arith.constant 0 : index
    %c3_19 = arith.constant 3 : index
    %33 = vector.load %arg1[%c0_18, %c3_19] : memref<8x4xf32, #tpu.memory_space<vmem>>, vector<8x1xf32>
    %34 = vector.broadcast %33 : vector<8x1xf32> to vector<8x128xf32>
    %35 = vector.broadcast %32 : vector<1x128xf32> to vector<8x128xf32>
    %36 = arith.mulf %34, %35 : vector<8x128xf32>
    %37 = arith.addf %26, %36 : vector<8x128xf32>
    %c0_20 = arith.constant 0 : index
    %c3_21 = arith.constant 3 : index
    %38 = vector.load %arg2[%c0_20, %c3_21] : memref<8x4xf32, #tpu.memory_space<vmem>>, vector<8x1xf32>
    %39 = vector.broadcast %38 : vector<8x1xf32> to vector<8x128xf32>
    %40 = vector.broadcast %32 : vector<1x128xf32> to vector<8x128xf32>
    %41 = arith.mulf %39, %40 : vector<8x128xf32>
    %42 = arith.addf %31, %41 : vector<8x128xf32>
    %c0_22 = arith.constant 0 : index
    %c0_23 = arith.constant 0 : index
    %43 = vector.load %arg4[%c0_22, %c0_23] : memref<1x128xf32, #tpu.memory_space<vmem>>, vector<1x128xf32>
    %44 = vector.broadcast %43 : vector<1x128xf32> to vector<8x128xf32>
    %45 = arith.mulf %37, %44 : vector<8x128xf32>
    %c0_24 = arith.constant 0 : index
    %c0_25 = arith.constant 0 : index
    %46 = vector.load %arg5[%c0_24, %c0_25] : memref<1x128xf32, #tpu.memory_space<vmem>>, vector<1x128xf32>
    %47 = vector.broadcast %46 : vector<1x128xf32> to vector<8x128xf32>
    %48 = arith.addf %45, %47 : vector<8x128xf32>
    %49 = math.sin %48 : vector<8x128xf32>
    %cst = arith.constant 0.000000e+00 : f32
    %50 = vector.broadcast %cst : f32 to vector<8x128xf32>
    %51 = arith.cmpf oeq, %42, %50 : vector<8x128xf32>
    %c0_26 = arith.constant 0 : index
    %c0_27 = arith.constant 0 : index
    %52 = vector.load %arg6[%c0_26, %c0_27] : memref<4x128xf32, #tpu.memory_space<vmem>>, vector<1x128xf32>
    %cst_28 = arith.constant 0.000000e+00 : f32
    %53 = vector.shape_cast %52 : vector<1x128xf32> to vector<1x128xf32>
    %54 = vector.broadcast %53 : vector<1x128xf32> to vector<8x128xf32>
    %55 = vector.broadcast %cst_28 : f32 to vector<8x128xf32>
    %56 = arith.select %51, %54, %55 : vector<8x128xi1>, vector<8x128xf32>
    %57 = arith.addf %49, %56 : vector<8x128xf32>
    %cst_29 = arith.constant 1.000000e+00 : f32
    %58 = vector.broadcast %cst_29 : f32 to vector<8x128xf32>
    %59 = arith.cmpf oeq, %42, %58 : vector<8x128xf32>
    %c1_30 = arith.constant 1 : index
    %c0_31 = arith.constant 0 : index
    %60 = vector.load %arg6[%c1_30, %c0_31] : memref<4x128xf32, #tpu.memory_space<vmem>>, vector<1x128xf32>
    %cst_32 = arith.constant 0.000000e+00 : f32
    %61 = vector.shape_cast %60 : vector<1x128xf32> to vector<1x128xf32>
    %62 = vector.broadcast %61 : vector<1x128xf32> to vector<8x128xf32>
    %63 = vector.broadcast %cst_32 : f32 to vector<8x128xf32>
    %64 = arith.select %59, %62, %63 : vector<8x128xi1>, vector<8x128xf32>
    %65 = arith.addf %57, %64 : vector<8x128xf32>
    %cst_33 = arith.constant 2.000000e+00 : f32
    %66 = vector.broadcast %cst_33 : f32 to vector<8x128xf32>
    %67 = arith.cmpf oeq, %42, %66 : vector<8x128xf32>
    %c2_34 = arith.constant 2 : index
    %c0_35 = arith.constant 0 : index
    %68 = vector.load %arg6[%c2_34, %c0_35] : memref<4x128xf32, #tpu.memory_space<vmem>>, vector<1x128xf32>
    %cst_36 = arith.constant 0.000000e+00 : f32
    %69 = vector.shape_cast %68 : vector<1x128xf32> to vector<1x128xf32>
    %70 = vector.broadcast %69 : vector<1x128xf32> to vector<8x128xf32>
    %71 = vector.broadcast %cst_36 : f32 to vector<8x128xf32>
    %72 = arith.select %67, %70, %71 : vector<8x128xi1>, vector<8x128xf32>
    %73 = arith.addf %65, %72 : vector<8x128xf32>
    %cst_37 = arith.constant 3.000000e+00 : f32
    %74 = vector.broadcast %cst_37 : f32 to vector<8x128xf32>
    %75 = arith.cmpf oeq, %42, %74 : vector<8x128xf32>
    %c3_38 = arith.constant 3 : index
    %c0_39 = arith.constant 0 : index
    %76 = vector.load %arg6[%c3_38, %c0_39] : memref<4x128xf32, #tpu.memory_space<vmem>>, vector<1x128xf32>
    %cst_40 = arith.constant 0.000000e+00 : f32
    %77 = vector.shape_cast %76 : vector<1x128xf32> to vector<1x128xf32>
    %78 = vector.broadcast %77 : vector<1x128xf32> to vector<8x128xf32>
    %79 = vector.broadcast %cst_40 : f32 to vector<8x128xf32>
    %80 = arith.select %75, %78, %79 : vector<8x128xi1>, vector<8x128xf32>
    %81 = arith.addf %73, %80 : vector<8x128xf32>
    %c0_41 = arith.constant 0 : index
    %c0_42 = arith.constant 0 : index
    %82 = vector.load %arg7[%c0_41, %c0_42] : memref<8x128xf32, #tpu.memory_space<vmem>>, vector<8x128xf32>
    tpu.vector_store %arg7[%c0_41, %c0_42], %81 {strides = array<i32>} : memref<8x128xf32, #tpu.memory_space<vmem>>, vector<8x128xf32>,
    return
  }
  func.func @transform_0(%arg0: i32) -> (i32, i32) {
    %c0_i32 = arith.constant 0 : i32
    %c0_i32_0 = arith.constant 0 : i32
    return %arg0, %c0_i32 : i32, i32
  }
  func.func @transform_1(%arg0: i32) -> (i32, i32) {
    %c0_i32 = arith.constant 0 : i32
    %c0_i32_0 = arith.constant 0 : i32
    return %arg0, %c0_i32 : i32, i32
  }
  func.func @transform_2(%arg0: i32) -> (i32, i32) {
    %c0_i32 = arith.constant 0 : i32
    %c0_i32_0 = arith.constant 0 : i32
    %c0_i32_1 = arith.constant 0 : i32
    return %c0_i32, %c0_i32_0 : i32, i32
  }
  func.func @transform_3(%arg0: i32) -> (i32, i32) {
    %c0_i32 = arith.constant 0 : i32
    %c0_i32_0 = arith.constant 0 : i32
    %c0_i32_1 = arith.constant 0 : i32
    return %c0_i32, %c0_i32_0 : i32, i32
  }
  func.func @transform_4(%arg0: i32) -> (i32, i32) {
    %c0_i32 = arith.constant 0 : i32
    %c0_i32_0 = arith.constant 0 : i32
    %c0_i32_1 = arith.constant 0 : i32
    return %c0_i32, %c0_i32_0 : i32, i32
  }
  func.func @transform_5(%arg0: i32) -> (i32, i32) {
    %c0_i32 = arith.constant 0 : i32
    %c0_i32_0 = arith.constant 0 : i32
    %c0_i32_1 = arith.constant 0 : i32
    return %c0_i32, %c0_i32_0 : i32, i32
  }
  func.func @transform_6(%arg0: i32) -> (i32, i32) {
    %c0_i32 = arith.constant 0 : i32
    %c0_i32_0 = arith.constant 0 : i32
    return %arg0, %c0_i32 : i32, i32
  }
}

</mosaic_0001>

<bundles_post_ra>
// kernel: tpu_custom_call.1
= control target key start
LH: loop header
LB: loop body
LE: loop exit
PB: predicated region body
PF: predicated region fallthrough
CT: control target
= control target key end

     0   :  { %v325_v1 = vmov 2   ;;  %v326_v2 = vmov 0   ;;  %s446_s0 = inlined_call_operand.vmem [shape: f32[8,4], index: 0, kind: input, shape index: {}]   ;;  %s447_s1 = inlined_call_operand.vmem [shape: f32[8,4], index: 1, kind: input, shape index: {}]   ;;  %s448_s2 = inlined_call_operand.vmem [shape: f32[4,128], index: 2, kind: input, shape index: {}]   ;;  %s449_s3 = inlined_call_operand.vmem [shape: f32[1,128], index: 3, kind: input, shape index: {}]   ;;  %s450_s4 = inlined_call_operand.vmem [shape: f32[1,128], index: 4, kind: input, shape index: {}]   ;;  %s451_s5 = inlined_call_operand.vmem [shape: f32[4,128], index: 5, kind: input, shape index: {}]   ;;  %s452_s6 = inlined_call_operand.hbm [shape: f32[8,128], index: 6, kind: output, shape index: {}]  }
   0x1   :  { %v24_v0 = vld [vmem:[%s446_s0] sm:$0xff]  ;;  %292 = vset.pattern.permute.xlu1 %v325_v1  ;;  %290 = vset.pattern.permute.xlu0 %v326_v2 }
   0x2   :  { %11 = vsyncpa [#allocation3], 0  ;;  %62 = vperm.xlu1 %292, %v24_v0   ;;  %28 = vperm.xlu0 %290, %v24_v0   ;;  %v327_v3 = vmov 3   ;;  %v328_v4 = vmov 1   ;;  %v36_v5 = vld [vmem:[%s447_s1] sm:$0xff]  ;;  %s335_s16 = smov [#allocation2]  }
   0x3   :  { %v261_v8 = vld [vmem:[%s448_s2] ss:$0 sm:$0xff]  ;;  %v262_v9 = vld [vmem:[%s448_s2 + $0x1] ss:$0 sm:$0xff]  ;;  %v263_v10 = vld [vmem:[%s448_s2 + $0x2] ss:$0 sm:$0xff] }
   0x4   :  { %v264_v12 = vld [vmem:[%s448_s2 + $0x3] ss:$0 sm:$0xff]  ;;  %v265_v23 = vld [vmem:[%s449_s3] ss:$0 sm:$0xff]  ;;  %v329_v46 = vmov 683565275  }
   0x5   :  { %v266_v26 = vld [vmem:[%s450_s4] ss:$0 sm:$0xff]  ;;  %v330_v48 = vmov 2475754826   ;;  %v331_v51 = vmov 2131351028  }
   0x6   :  { %293 = vset.pattern.permute.xlu1 %v327_v3  ;;  %291 = vset.pattern.permute.xlu0 %v328_v4  ;;  %v332_v54 = vmov 2102212464   ;;  %v333_v57 = vmov 920167782   ;;  %v334_v60 = vmov 1326507024  }
   0x7   :  { %79 = vperm.xlu1 %293, %v24_v0   ;;  %45 = vperm.xlu0 %291, %v24_v0   ;;  %s253_s17 = sshll.u32 %s335_s16, 4  ;;  %s254_s17 = int_to_ptr.vmem [resolvable:$true] %s253_s17 }
   0x8   :  { %s301_s18 = scalar_lea.vmem %s254_s17, 128  ;;  %p306_p1 = scmp.lt.s32.totalorder %s254_s17, %s254_s17 }
   0x9   :  { %p302_p0 = scmp.ne.s32.totalorder %s254_s17, %s301_s18  ;;  %p307_p2 = scmp.lt.s32.totalorder %s301_s18, %s301_s18 }
   0xb   :  { %294 = vset.pattern.permute.xlu1 %v326_v2  ;;  %55 = vperm.xlu0 %291, %v36_v5   ;;  %p308_p3 = por %p307_p2, %p306_p1 }
   0xc   :  { %39 = vperm.xlu1 %294, %v36_v5  }
   0xd   :  { %p309_p4 = pnand %p308_p3, %p302_p0 }
   0xf   :  { %296 = vset.pattern.permute.xlu0 %v327_v3 }
  0x10   :  { %295 = vset.pattern.permute.xlu1 %v325_v1  ;;  %89 = vperm.xlu0 %296, %v36_v5  }
  0x11   :  { %72 = vperm.xlu1 %295, %v36_v5  }
  0x81   :  { %v29_v6 = vpop.permute.xlu0 %28  ;;  %v63_v7 = vpop.permute.xlu1 %62 }
  0x82   :  { %v35_v14 = vmul.f32 %v261_v8, %v29_v6  ;;  %v69_v16 = vmul.f32 %v263_v10, %v63_v7 }
  0x86   :  { %v46_v11 = vpop.permute.xlu0 %45  ;;  %v80_v13 = vpop.permute.xlu1 %79 }
  0x87   :  { %v52_v15 = vmul.f32 %v262_v9, %v46_v11  ;;  %v86_v18 = vmul.f32 %v264_v12, %v80_v13 }
  0x89   :  { %v53_v17 = vadd.f32 %v52_v15, %v35_v14 }
  0x8a   :  { %v56_v19 = vpop.permute.xlu0 %55 }
  0x8b   :  { %v70_v20 = vadd.f32 %v69_v16, %v53_v17  ;;  %v58_v21 = vmul.f32 %v262_v9, %v56_v19  ;;  %v40_v22 = vpop.permute.xlu1 %39 }
  0x8c   :  { %v42_v24 = vmul.f32 %v261_v8, %v40_v22 }
  0x8d   :  { %v87_v25 = vadd.f32 %v86_v18, %v70_v20 }
  0x8e   :  { %v59_v27 = vadd.f32 %v58_v21, %v42_v24 }
  0x8f   :  { %v101_v28 = vmul.f32 %v265_v23, %v87_v25  ;;  %v90_v29 = vpop.permute.xlu0 %89 }
  0x90   :  { %v73_v30 = vpop.permute.xlu1 %72  ;;  %v92_v33 = vmul.f32 %v264_v12, %v90_v29 }
  0x91   :  { %v395_v31 = vadd.f32 %v266_v26, %v101_v28  ;;  %v75_v32 = vmul.f32 %v263_v10, %v73_v30 }
  0x93   :  { %v113_v34 = vand.u32 2139095040, %v395_v31  ;;  %v76_v35 = vadd.f32 %v75_v32, %v59_v27  ;;  %v110_v40 = vand.u32 2147483647, %v395_v31  ;;  %vm112_vm7 = vcmp.lt.s32.totalorder %v395_v31, 0 }
  0x94   :  { %vm202_vm13 = vweird.f32 %v395_v31 }
  0x95   :  { %v114_v36 = vshrl.u32 %v113_v34, 23  ;;  %v398_v37 = vadd.f32 %v92_v33, %v76_v35  ;;  %v117_v43 = vand.u32 8388607, %v110_v40  ;;  %vm111_vm8 = vcmp.le.f32.partialorder %v110_v40, 0.7853982 }
  0x96   :  { %v271_v40 = vld [vmem:[%s451_s5] ss:$0 sm:$0xff] }
  0x97   :  { %v267_v38 = vadd.s32 4294967169, %v114_v36  ;;  %v118_v62 = vor.u32 8388608, %v117_v43  ;;  %vm214_vm11 = vcmp.eq.f32.partialorder %v398_v37, 0.0  ;;  %vm222_vm14 = vcmp.eq.f32.partialorder %v398_v37, 1.0 }
  0x98   :  { %vm230_vm15 = vcmp.eq.f32.partialorder %v398_v37, 2.0 }
  0x99   :  { %v120_v39 = vadd.s32 1, %v267_v38  ;;  %v158_v12 = vshll.u32 %v118_v62, 8 }
  0x9b   :  { %vm121_vm0 = vcmp.gt.s32.totalorder %v120_v39, 0 }
  0x9c   :  { %v122_v41 = vsel %vm121_vm0, %v120_v39, 0  ;;  %vm238_vm0 = vcmp.eq.f32.partialorder %v398_v37, 3.0 }
  0x9d   :  { %v124_v42 = vand.u32 31, %v122_v41  ;;  %v123_v45 = vshrl.u32 %v122_v41, 5 }
  0x9f   :  { %v125_v44 = vsub.s32 32, %v124_v42  ;;  %v127_v47 = vshll.u32 %v329_v46, %v124_v42  ;;  %v130_v49 = vshll.u32 %v330_v48, %v124_v42  ;;  %v133_v53 = vshll.u32 %v331_v51, %v124_v42 }
  0xa0   :  { %v136_v56 = vshll.u32 %v332_v54, %v124_v42  ;;  %v139_v59 = vshll.u32 %v333_v57, %v124_v42  ;;  %vm142_vm1 = vcmp.lt.s32.totalorder %v123_v45, 1  ;;  %vm145_vm2 = vcmp.lt.s32.totalorder %v123_v45, 4 }
  0xa1   :  { %v128_v50 = vshrl.u32 %v330_v48, %v125_v44  ;;  %v131_v52 = vshrl.u32 %v331_v51, %v125_v44  ;;  %v134_v55 = vshrl.u32 %v332_v54, %v125_v44  ;;  %v137_v58 = vshrl.u32 %v333_v57, %v125_v44 }
  0xa2   :  { %v140_v61 = vshrl.u32 %v334_v60, %v125_v44  ;;  %v126_v7 = vshrl.u32 %v329_v46, %v125_v44  ;;  %vm144_vm3 = vcmp.lt.s32.totalorder %v123_v45, 3  ;;  %vm143_vm4 = vcmp.lt.s32.totalorder %v123_v45, 2 }
  0xa3   :  { %v129_v63 = vor.u32 %v128_v50, %v127_v47  ;;  %v132_v0 = vor.u32 %v131_v52, %v130_v49  ;;  %v135_v1 = vor.u32 %v134_v55, %v133_v53  ;;  %v138_v2 = vor.u32 %v137_v58, %v136_v56 }
  0xa4   :  { %v141_v3 = vor.u32 %v140_v61, %v139_v59 }
  0xa5   :  { %v147_v4 = vsel %vm145_vm2, %v135_v1, 2102212464  ;;  %v150_v5 = vsel %vm142_vm1, %v129_v63, %v132_v0  ;;  %v154_v6 = vsel %vm142_vm1, %v132_v0, %v135_v1  ;;  %v151_v8 = vsel %vm145_vm2, %v138_v2, 920167782 }
  0xa6   :  { %v155_v9 = vsel %vm145_vm2, %v141_v3, 1326507024  ;;  %v152_v10 = vsel %vm144_vm3, %v135_v1, %v151_v8  ;;  %v146_v13 = vsel %vm142_vm1, %v126_v7, %v129_v63  ;;  %v148_v14 = vsel %vm144_vm3, %v132_v0, %v147_v4  ;;  %v272_v1 = vld [vmem:[%s451_s5 + $0x1] ss:$0 sm:$0xff] }
  0xa7   :  { %v156_v11 = vsel %vm144_vm3, %v138_v2, %v155_v9  ;;  %v153_v15 = vsel %vm143_vm4, %v150_v5, %v152_v10  ;;  %v149_v21 = vsel %vm143_vm4, %v146_v13, %v148_v14  ;;  %v220_v3 = vsel %vm214_vm11, %v271_v40, 0.0  ;;  %v273_v5 = vld [vmem:[%s451_s5 + $0x2] ss:$0 sm:$0xff] }
  0xa8   :  { %v157_v16 = vsel %vm143_vm4, %v154_v6, %v156_v11  ;;  %v406_v19 = vmul.u32.u64.low %v158_v12, %v153_v15  ;;  %v407_v20 = vmul.u32.u64.high %v158_v12, %v153_v15, %v406_v19  ;;  %v165_v23 = vmul.u32 %v158_v12, %v149_v21 }
  0xa9   :  { %v403_v17 = vmul.u32.u64.low %v158_v12, %v157_v16  ;;  %v404_v18 = vmul.u32.u64.high %v158_v12, %v157_v16, %v403_v17  ;;  %v228_v6 = vsel %vm222_vm14, %v272_v1, 0.0  ;;  %v236_v8 = vsel %vm230_vm15, %v273_v5, 0.0 }
  0xaa   :  { %v168_v22 = vadd.s32 1, %v407_v20 }
  0xab   :  { %vm167_vm5 = vc.u32 %v404_v18, %v406_v19  ;;  %v166_v36 = vadd.s32 %v406_v19, %v404_v18 }
  0xac   :  { %v169_v24 = vsel %vm167_vm5, %v168_v22, %v407_v20 }
  0xad   :  { %v170_v25 = vadd.s32 %v169_v24, %v165_v23 }
  0xaf   :  { %v171_v26 = vadd.s32 536870912, %v170_v25 }
  0xb1   :  { %v172_v27 = vshrl.u32 %v171_v26, 30 }
  0xb3   :  { %v173_v28 = vshll.u32 %v172_v27, 30  ;;  %v196_v50 = vsub.s32 4, %v172_v27 }
  0xb5   :  { %v174_v29 = vsub.s32 %v170_v25, %v173_v28  ;;  %v197_v53 = vsel %vm112_vm7, %v196_v50, %v172_v27 }
  0xb6   :  { %v199_v55 = vsel %vm111_vm8, 0, %v197_v53 }
  0xb7   :  { %v176_v30 = vsub.s32 0, %v174_v29  ;;  %v203_v56 = vadd.s32 3, %v199_v55 }
  0xb9   :  { %v268_v32 = vmin.u32 %v176_v30, %v174_v29  ;;  %v204_v57 = vand.u32 3, %v203_v56 }
  0xbb   :  { %v178_v33 = vclz %v268_v32  ;;  %vm209_vm9 = vcmp.eq.s32.totalorder %v204_v57, 2  ;;  %vm206_vm10 = vcmp.eq.s32.totalorder %v204_v57, 0  ;;  %vm205_vm12 = vcmp.lt.s32.totalorder %v204_v57, 2 }
  0xbd   :  { %v269_v34 = vadd.s32 4294967294, %v178_v33 }
  0xbf   :  { %vm270_vm6 = vcmp.lt.s32.totalorder %v269_v34, 0 }
  0xc0   :  { %v181_v35 = vsel %vm270_vm6, 0, %v269_v34 }
  0xc1   :  { %v182_v38 = vsub.s32 32, %v181_v35  ;;  %v186_v39 = vsub.s32 4294967266, %v181_v35  ;;  %v183_v41 = vshll.u32 %v174_v29, %v181_v35 }
  0xc3   :  { %v184_v42 = vshrl.u32 %v166_v36, %v182_v38  ;;  %v187_v43 = vadd.s32 127, %v186_v39 }
  0xc5   :  { %v185_v44 = vor.u32 %v184_v42, %v183_v41  ;;  %v188_v45 = vshll.u32 %v187_v43, 23 }
  0xc7   :  { %v189_v46 = vor.u32 4788187, %v188_v45  ;;  %v192_v48 = vcvt.s32.f32 %v185_v44 }
  0xc9   :  { %v190_v47 = vand.u32 2147483647, %v189_v46 }
  0xcb   :  { %v193_v49 = vmul.f32 %v192_v48, %v190_v47 }
  0xcd   :  { %v194_v51 = vxor.u32 2147483648, %v193_v49 }
  0xcf   :  { %v195_v52 = vsel %vm112_vm7, %v194_v51, %v193_v49 }
  0xd0   :  { %v198_v54 = vsel %vm111_vm8, %v395_v31, %v195_v52  ;;  %v274_v31 = vld [vmem:[%s451_s5 + $0x3] ss:$0 sm:$0xff] }
  0xd1   :  { %297 = vcosq.f32 %v198_v54  ;;  %v244_v10 = vsel %vm238_vm0, %v274_v31, 0.0 }
  0xd2   :  { %299 = vsinq.f32 %v198_v54 }
  0xdb   :  { %v298_v58 = vpop.eup %297 }
  0xdc   :  { %v300_v59 = vpop.eup %299  ;;  %v210_v60 = vxor.u32 2147483648, %v298_v58 }
  0xdd   :  { %v207_v61 = vxor.u32 2147483648, %v300_v59 }
  0xde   :  { %v211_v62 = vsel %vm209_vm9, %v210_v60, %v300_v59 }
  0xdf   :  { %v208_v63 = vsel %vm206_vm10, %v298_v58, %v207_v61 }
  0xe0   :  { %v212_v0 = vsel %vm205_vm12, %v208_v63, %v211_v62 }
  0xe1   :  { %v213_v2 = vsel %vm202_vm13, nan, %v212_v0 }
  0xe2   :  { %v221_v4 = vadd.f32 %v220_v3, %v213_v2 }
  0xe4   :  { %v229_v7 = vadd.f32 %v228_v6, %v221_v4 }
  0xe6   :  { %v237_v9 = vadd.f32 %v236_v8, %v229_v7 }
  0xe8   :  { %v245_v11 = vadd.f32 %v244_v10, %v237_v9 }
  0xea   :  { %246 = vst [vmem:[#allocation2] sm:$0xff] %v245_v11 }
  0xeb   :  { %312 = shalt.err (!%p309_p4)
}
  0xec   :  { %s313_s21 = scalar_lea.hbm %s452_s6, 128 }
  0xed   :  { %p314_p5 = scmp.ne.s32.totalorder %s452_s6, %s313_s21  ;;  %p317_p6 = scmp.lt.u32.totalorder %s313_s21, %s452_s6 }
  0xef   :  { %p319_p7 = pnand %p317_p6, %p314_p5 }
  0xf1   :  { %322 = shalt.err (!%p319_p7)
}
  0xf2   :  { %256 = dma.vmem_to_hbm [thread:$0]  %s254_s17, 128, %s452_s6, [#allocation3]  }
  0xf3   :  { %323 = dma.done.wait [#allocation3], 128  }
  0xf4   :  { %324 = vsyncadd [#allocation3], 4294967168 }
  0xf5   :  { %260 = vsyncpa [#allocation3], 1 }

</bundles_post_ra>
